<compile_context>
chip_gen: v5e
topology: v5e:2x2
jax: 0.10.0
libtpu: 0.0.40
codegen_flags: <defaults>
</compile_context>

<pallas_src>
import functools

import numpy as np

import jax
import jax.numpy as jnp
from jax.experimental import pallas as pl
from jax.experimental.pallas import tpu as pltpu


MIX_LAYER = 3
_LANES = 128  # lane-dense output width

_VMEM = pl.BlockSpec(memory_space=pltpu.MemorySpace.VMEM)


# ------------------------------ fused kernel --------------------------------

def _fused_forward_kernel(x_ref, xcat_ref, sw_ref, sb_ref, w1e_ref, w1o_ref,
                          b1_ref, sfw_ref, sfb_ref, w2_ref, b2_ref,
                          f2w_ref, f2b_ref, cwa_ref, cwc_ref, cwt_ref, cb_ref,
                          o_ref):
    """Entire CustomSimpleModel forward; all data stays in VMEM / vregs."""
    f32 = jnp.float32

    def mm(a, w):
        return jnp.dot(a, w, preferred_element_type=f32)

    def relu(v):
        return jnp.maximum(v, 0.0)

    x = x_ref[...]                       # (2B, E): rows [com (B); text (B)]
    b = x.shape[0] // 2
    xcat = xcat_ref[...]                 # (B, 2E): [com | text] along lanes

    # --- simple_layer (FcUnit: fc -> relu; dropout p=0 -> identity), batched.
    dense = relu(mm(x, sw_ref[...]) + sb_ref[...])                 # (2B, SIMPLE_F)

    # --- seq_embed_layer: Conv1d(k=2,s=1,p=1) + ReLU + MaxPool1d(2) + Flatten + FcUnit.
    #     Conv+pool folded (at init) into two pooling-candidate matrices; max on VPU.
    bias1 = b1_ref[...]
    y_even = relu(mm(dense, w1e_ref[...]) + bias1)                 # conv columns 2j
    y_odd = relu(mm(dense, w1o_ref[...]) + bias1)                  # conv columns 2j+1
    pooled1 = jnp.maximum(y_even, y_odd)                           # (2B, C1*Lp) channel-major
    seq_out = relu(mm(pooled1, sfw_ref[...]) + sfb_ref[...])       # (2B, SEQ_FC)
    seq_com, seq_text = seq_out[:b], seq_out[b:]

    # --- common_embed_layer: Conv2d(k=2,s=1,p=2) + ReLU + MaxPool2d(2) + Flatten + FcUnit.
    #     inputs_addition rows are [com, text]*4 -> conv folded per pooling candidate
    #     into one (2E, f2) matrix acting on [com|text]; 4 candidates, max on VPU.
    bias2 = b2_ref[...]
    pooled2 = None
    for k in range(4):
        cand = relu(mm(xcat, w2_ref[k]) + bias2)                   # (B, C2*Hp*Wp)
        pooled2 = cand if pooled2 is None else jnp.maximum(pooled2, cand)
    out_add = relu(mm(pooled2, f2w_ref[...]) + f2b_ref[...])       # (B, FC2D)

    # --- concat_layer: torch.concat folded into per-block weight slices.
    #     Output is lane-padded to 128 for a lane-dense store (sliced once outside).
    o_ref[...] = relu(mm(out_add, cwa_ref[...]) + mm(seq_com, cwc_ref[...]) +
                      mm(seq_text, cwt_ref[...]) + cb_ref[...])


# ------------------------- init-time weight folding -------------------------

def prepare_params(raw, mix_layer=MIX_LAYER):
    """Fold conv/pool/repeat/concat structure into dense effective matrices.

    Runs once at parameter-initialization time (NumPy, host side).  Exact:
    every folded matrix reproduces the corresponding linear map of the module.
    """
    E, simple_f = raw["simple_w"].shape
    c1 = raw["c1_w"].shape[0]
    c2 = raw["c2_w"].shape[0]
    seq_fc = raw["seq_fc_w"].shape[1]
    fc2d = raw["fc2d_w"].shape[1]
    concat_f = raw["concat_w"].shape[1]

    # ---- Conv1d(k=2, s=1, p=1) + MaxPool1d(2) on rows of length simple_f ----
    lc = simple_f + 1                  # conv output length (33)
    lp = lc // 2                       # pooled length (16); last conv col dropped
    w1 = np.asarray(raw["c1_w"], np.float32)      # (C1, 1, 2)
    b1v = np.asarray(raw["c1_b"], np.float32)
    w1e = np.zeros((simple_f, c1 * lp), np.float32)   # conv columns 2j
    w1o = np.zeros((simple_f, c1 * lp), np.float32)   # conv columns 2j+1
    b1 = np.zeros((1, c1 * lp), np.float32)
    for c in range(c1):
        for j in range(lp):
            col = c * lp + j
            b1[0, col] = b1v[c]
            # conv[c, 2j]   = w00*xp[2j]   + w01*xp[2j+1] ; xp = zero-padded input
            if 2 * j - 1 >= 0:
                w1e[2 * j - 1, col] += w1[c, 0, 0]
            if 2 * j < simple_f:
                w1e[2 * j, col] += w1[c, 0, 1]
            # conv[c, 2j+1] = w00*xp[2j+1] + w01*xp[2j+2]
            if 2 * j < simple_f:
                w1o[2 * j, col] += w1[c, 0, 0]
            if 2 * j + 1 < simple_f:
                w1o[2 * j + 1, col] += w1[c, 0, 1]

    # ---- Conv2d(k=2, s=1, p=2) + MaxPool2d(2) on inputs_addition -------------
    h_in = 2 + 2 * mix_layer           # 8 rows, alternating [com, text]
    w_in = E
    hc, wc = h_in + 3, w_in + 3        # conv output spatial (11, 19)
    hp, wp = hc // 2, wc // 2          # pooled (5, 9)
    f2 = c2 * hp * wp
    w2k = np.asarray(raw["c2_w"], np.float32)     # (C2, 1, 2, 2)
    b2v = np.asarray(raw["c2_b"], np.float32)
    # w2[k] acts on [com | text] (2E features); rows 0:E are com, E:2E are text.
    w2 = np.zeros((4, 2 * E, f2), np.float32)
    b2 = np.zeros((1, f2), np.float32)
    cands = ((0, 0), (0, 1), (1, 0), (1, 1))
    for c in range(c2):
        for i in range(hp):
            for j in range(wp):
                col = c * hp * wp + i * wp + j
                b2[0, col] = b2v[c]
                for k, (dh, dw) in enumerate(cands):
                    oh, ow = 2 * i + dh, 2 * j + dw
                    for kh in range(2):
                        for kw in range(2):
                            r, s = oh + kh - 2, ow + kw - 2     # padding = 2
                            if 0 <= r < h_in and 0 <= s < w_in:
                                if r % 2 == 0:                   # even rows = com
                                    w2[k, s, col] += w2k[c, 0, kh, kw]
                                else:                            # odd rows = text
                                    w2[k, E + s, col] += w2k[c, 0, kh, kw]

    # ---- concat_layer: split weight by concat blocks, pad N to 128 (lane-dense) ----
    cw = np.asarray(raw["concat_w"], np.float32)  # (fc2d + 2*seq_fc, concat_f)
    cb = np.asarray(raw["concat_b"], np.float32).reshape(1, concat_f)

    def pad_n(m):
        return np.pad(m, ((0, 0), (0, _LANES - m.shape[1])))

    cwa = pad_n(cw[0:fc2d])                       # output_addition block
    cwc = pad_n(cw[fc2d:fc2d + seq_fc])           # com_embed_output block
    cwt = pad_n(cw[fc2d + seq_fc:])               # text_embed_output block
    cbp = pad_n(cb)

    return {
        "sw": jnp.asarray(raw["simple_w"]),
        "sb": jnp.asarray(raw["simple_b"]).reshape(1, -1),
        "w1e": jnp.asarray(w1e), "w1o": jnp.asarray(w1o), "b1": jnp.asarray(b1),
        "sfw": jnp.asarray(raw["seq_fc_w"]),
        "sfb": jnp.asarray(raw["seq_fc_b"]).reshape(1, -1),
        "w2": jnp.asarray(w2), "b2": jnp.asarray(b2),
        "f2w": jnp.asarray(raw["fc2d_w"]),
        "f2b": jnp.asarray(raw["fc2d_b"]).reshape(1, -1),
        "cwa": jnp.asarray(cwa), "cwc": jnp.asarray(cwc), "cwt": jnp.asarray(cwt),
        "cb": jnp.asarray(cbp),
        "out_features": concat_f,
    }


# ------------------------------ forward wrapper ------------------------------

def custom_simple_model_forward(fp, eles, text_embeds, com_embeds,
                                com_tsne_embeds, action_embeds, labels):
    # eles / com_tsne_embeds / action_embeds / labels are unused (as in PyTorch).
    B = com_embeds.shape[0]
    com = com_embeds.astype(jnp.float32)
    text = text_embeds.astype(jnp.float32)
    # Batch the two branches: stack [com; text] along M (tiny XLA concat), and
    # build the [com | text] lane-concat once here so the kernel has no lane shuffles.
    x = jnp.concatenate([com, text], axis=0)        # (2B, E)
    xcat = jnp.concatenate([com, text], axis=1)     # (B, 2E)

    operands = (x, xcat, fp["sw"], fp["sb"], fp["w1e"], fp["w1o"], fp["b1"],
                fp["sfw"], fp["sfb"], fp["w2"], fp["b2"],
                fp["f2w"], fp["f2b"], fp["cwa"], fp["cwc"], fp["cwt"], fp["cb"])

    # TODO(synk): if batch grows (B >> 2), add a leading grid axis over batch with
    # dimension_semantics=("parallel",) so both v7x TensorCores are used.
    out_padded = pl.pallas_call(
        _fused_forward_kernel,
        out_shape=jax.ShapeDtypeStruct((B, fp["cb"].shape[1]), jnp.float32),
        in_specs=[_VMEM] * len(operands),
        out_specs=_VMEM,
    )(*operands)
    return out_padded[:, :fp["out_features"]]     # single slice of the lane-dense slab


# ------------------------------ NumPy reference ------------------------------

def _numpy_reference(raw, text_embeds, com_embeds, mix_layer=MIX_LAYER):
    """Direct (unfolded) implementation of the PyTorch forward, for verification."""
    com = np.asarray(com_embeds, np.float64)
    text = np.asarray(text_embeds, np.float64)
    bn, E = com.shape
    relu = lambda v: np.maximum(v, 0.0)

    sw = np.asarray(raw["simple_w"], np.float64)
    sb = np.asarray(raw["simple_b"], np.float64)
    com_dense = relu(com @ sw + sb)
    text_dense = relu(text @ sw + sb)

    c1w = np.asarray(raw["c1_w"], np.float64)
    c1b = np.asarray(raw["c1_b"], np.float64)
    sfw = np.asarray(raw["seq_fc_w"], np.float64)
    sfb = np.asarray(raw["seq_fc_b"], np.float64)

    def seq_embed(xrow):
        b_, L = xrow.shape
        C = c1w.shape[0]
        xp = np.zeros((b_, L + 2)); xp[:, 1:L + 1] = xrow
        lc = L + 1
        conv = np.zeros((b_, C, lc))
        for c in range(C):
            conv[:, c, :] = c1w[c, 0, 0] * xp[:, 0:lc] + c1w[c, 0, 1] * xp[:, 1:lc + 1] + c1b[c]
        conv = relu(conv)
        lp = lc // 2
        pooled = np.maximum(conv[:, :, 0:2 * lp:2], conv[:, :, 1:2 * lp:2])
        return relu(pooled.reshape(b_, C * lp) @ sfw + sfb)

    com_eo = seq_embed(com_dense)
    text_eo = seq_embed(text_dense)

    H = 2 + 2 * mix_layer
    img = np.zeros((bn, H, E))
    for r in range(H):
        img[:, r, :] = com if r % 2 == 0 else text
    c2w = np.asarray(raw["c2_w"], np.float64)
    c2b = np.asarray(raw["c2_b"], np.float64)
    xp = np.zeros((bn, H + 4, E + 4)); xp[:, 2:2 + H, 2:2 + E] = img
    hc, wc = H + 3, E + 3
    C = c2w.shape[0]
    conv = np.zeros((bn, C, hc, wc))
    for c in range(C):
        acc = np.zeros((bn, hc, wc))
        for kh in range(2):
            for kw in range(2):
                acc += c2w[c, 0, kh, kw] * xp[:, kh:kh + hc, kw:kw + wc]
        conv[:, c] = acc + c2b[c]
    conv = relu(conv)
    hp, wp = hc // 2, wc // 2
    cands = [conv[:, :, dh:2 * hp:2, dw:2 * wp:2] for dh in (0, 1) for dw in (0, 1)]
    pooled = np.max(np.stack(cands, axis=0), axis=0)
    out_add = relu(pooled.reshape(bn, C * hp * wp) @ np.asarray(raw["fc2d_w"], np.float64)
                   + np.asarray(raw["fc2d_b"], np.float64))

    cat = np.concatenate([out_add, com_eo, text_eo], axis=1)
    return relu(cat @ np.asarray(raw["concat_w"], np.float64)
                + np.asarray(raw["concat_b"], np.float64))


# ----------------------------------- main ------------------------------------

if __name__ == "__main__":
    B, E = 2, 16
    SIMPLE_F = 32      # simple_layer_list
    C1 = 4             # seq_embed_con1d_list
    SEQ_FC = 32        # seq_embed_fc_list
    C2 = 4             # seq_embed_con2d_list
    FC2D = 32          # seq_embed_2d_fc_list
    CONCAT_F = 16      # concat_layer_list

    # derived flatten sizes
    L_conv1 = SIMPLE_F + 1                       # 33
    seq_flat = C1 * (L_conv1 // 2)               # 64
    H_in = 2 + 2 * MIX_LAYER                     # 8
    Hc, Wc = H_in + 3, E + 3                     # 11, 19
    fc2d_flat = C2 * (Hc // 2) * (Wc // 2)       # 180

    key = jax.random.PRNGKey(0)
    ks = jax.random.split(key, 14)
    f32 = jnp.float32

    raw = {
        "simple_w": 0.1 * jax.random.normal(ks[0], (E, SIMPLE_F), f32),
        "simple_b": 0.1 * jax.random.normal(ks[1], (SIMPLE_F,), f32),
        "c1_w": 0.1 * jax.random.normal(ks[2], (C1, 1, 2), f32),
        "c1_b": 0.1 * jax.random.normal(ks[3], (C1,), f32),
        "seq_fc_w": 0.1 * jax.random.normal(ks[4], (seq_flat, SEQ_FC), f32),
        "seq_fc_b": 0.1 * jax.random.normal(ks[5], (SEQ_FC,), f32),
        "c2_w": 0.1 * jax.random.normal(ks[6], (C2, 1, 2, 2), f32),
        "c2_b": 0.1 * jax.random.normal(ks[7], (C2,), f32),
        "fc2d_w": 0.1 * jax.random.normal(ks[8], (fc2d_flat, FC2D), f32),
        "fc2d_b": 0.1 * jax.random.normal(ks[9], (FC2D,), f32),
        "concat_w": 0.1 * jax.random.normal(ks[10], (FC2D + SEQ_FC + SEQ_FC, CONCAT_F), f32),
        "concat_b": 0.1 * jax.random.normal(ks[11], (CONCAT_F,), f32),
    }
    params = prepare_params(raw)                 # init-time folding (host-side, once)

    ik = jax.random.split(ks[12], 2)
    text_embeds = jax.random.normal(ik[0], (B, E), f32)
    com_embeds = jax.random.normal(ik[1], (B, E), f32)
    # unused inputs (present only to mirror the PyTorch signature)
    eles = jnp.zeros((B, 4), f32)
    com_tsne_embeds = jnp.zeros((B, 2), f32)
    action_embeds = jnp.zeros((B, 8), f32)
    labels = jnp.zeros((B,), f32)

    fwd = jax.jit(functools.partial(custom_simple_model_forward, params))
    out = jax.block_until_ready(
        fwd(eles, text_embeds, com_embeds, com_tsne_embeds, action_embeds, labels))
    assert out.shape == (B, CONCAT_F), out.shape

    # verify against a direct (unfolded) NumPy implementation of the module
    ref = _numpy_reference(raw, text_embeds, com_embeds)
    np.testing.assert_allclose(np.asarray(out), ref, rtol=2e-2, atol=2e-2)
    print("KERNEL_OK")
</pallas_src>

<mosaic_0001>
module attributes {stable_mosaic.version = 11 : i64} {
  func.func @_fused_forward_kernel(%arg0: memref<4x16xf32, #tpu.memory_space<vmem>>, %arg1: memref<2x32xf32, #tpu.memory_space<vmem>>, %arg2: memref<16x32xf32, #tpu.memory_space<vmem>>, %arg3: memref<1x32xf32, #tpu.memory_space<vmem>>, %arg4: memref<32x64xf32, #tpu.memory_space<vmem>>, %arg5: memref<32x64xf32, #tpu.memory_space<vmem>>, %arg6: memref<1x64xf32, #tpu.memory_space<vmem>>, %arg7: memref<64x32xf32, #tpu.memory_space<vmem>>, %arg8: memref<1x32xf32, #tpu.memory_space<vmem>>, %arg9: memref<4x32x180xf32, #tpu.memory_space<vmem>>, %arg10: memref<1x180xf32, #tpu.memory_space<vmem>>, %arg11: memref<180x32xf32, #tpu.memory_space<vmem>>, %arg12: memref<1x32xf32, #tpu.memory_space<vmem>>, %arg13: memref<32x128xf32, #tpu.memory_space<vmem>>, %arg14: memref<32x128xf32, #tpu.memory_space<vmem>>, %arg15: memref<32x128xf32, #tpu.memory_space<vmem>>, %arg16: memref<1x128xf32, #tpu.memory_space<vmem>>, %arg17: memref<2x128xf32, #tpu.memory_space<vmem>>) attributes {dimension_semantics = [], scalar_prefetch = 0 : i64, scratch_operands = 0 : i64, tpu.core_type = #tpu.core_type<tc>} {
    %c0 = arith.constant 0 : index
    %c0_0 = arith.constant 0 : index
    %0 = vector.load %arg0[%c0, %c0_0] : memref<4x16xf32, #tpu.memory_space<vmem>>, vector<4x16xf32>
    %c0_1 = arith.constant 0 : index
    %c0_2 = arith.constant 0 : index
    %1 = vector.load %arg1[%c0_1, %c0_2] : memref<2x32xf32, #tpu.memory_space<vmem>>, vector<2x32xf32>
    %c0_3 = arith.constant 0 : index
    %c0_4 = arith.constant 0 : index
    %2 = vector.load %arg2[%c0_3, %c0_4] : memref<16x32xf32, #tpu.memory_space<vmem>>, vector<16x32xf32>
    %cst = arith.constant dense<0.000000e+00> : vector<4x32xf32>
    %3 = tpu.matmul %0, %2, %cst {dimension_numbers = #tpu.dot_dimension_numbers<[1], [0], [0], [1], [0, 0, 1, 1], [], []>} : vector<4x16xf32>, vector<16x32xf32>, vector<4x32xf32> -> vector<4x32xf32>
    %c0_5 = arith.constant 0 : index
    %c0_6 = arith.constant 0 : index
    %4 = vector.load %arg3[%c0_5, %c0_6] : memref<1x32xf32, #tpu.memory_space<vmem>>, vector<1x32xf32>
    %5 = vector.broadcast %4 : vector<1x32xf32> to vector<4x32xf32>
    %6 = arith.addf %3, %5 : vector<4x32xf32>
    %cst_7 = arith.constant 0.000000e+00 : f32
    %7 = vector.broadcast %cst_7 : f32 to vector<4x32xf32>
    %8 = arith.maximumf %6, %7 : vector<4x32xf32>
    %c0_8 = arith.constant 0 : index
    %c0_9 = arith.constant 0 : index
    %9 = vector.load %arg6[%c0_8, %c0_9] : memref<1x64xf32, #tpu.memory_space<vmem>>, vector<1x64xf32>
    %c0_10 = arith.constant 0 : index
    %c0_11 = arith.constant 0 : index
    %10 = vector.load %arg4[%c0_10, %c0_11] : memref<32x64xf32, #tpu.memory_space<vmem>>, vector<32x64xf32>
    %cst_12 = arith.constant dense<0.000000e+00> : vector<4x64xf32>
    %11 = tpu.matmul %8, %10, %cst_12 {dimension_numbers = #tpu.dot_dimension_numbers<[1], [0], [0], [1], [0, 0, 1, 1], [], []>} : vector<4x32xf32>, vector<32x64xf32>, vector<4x64xf32> -> vector<4x64xf32>
    %12 = vector.broadcast %9 : vector<1x64xf32> to vector<4x64xf32>
    %13 = arith.addf %11, %12 : vector<4x64xf32>
    %cst_13 = arith.constant 0.000000e+00 : f32
    %14 = vector.broadcast %cst_13 : f32 to vector<4x64xf32>
    %15 = arith.maximumf %13, %14 : vector<4x64xf32>
    %c0_14 = arith.constant 0 : index
    %c0_15 = arith.constant 0 : index
    %16 = vector.load %arg5[%c0_14, %c0_15] : memref<32x64xf32, #tpu.memory_space<vmem>>, vector<32x64xf32>
    %cst_16 = arith.constant dense<0.000000e+00> : vector<4x64xf32>
    %17 = tpu.matmul %8, %16, %cst_16 {dimension_numbers = #tpu.dot_dimension_numbers<[1], [0], [0], [1], [0, 0, 1, 1], [], []>} : vector<4x32xf32>, vector<32x64xf32>, vector<4x64xf32> -> vector<4x64xf32>
    %18 = vector.broadcast %9 : vector<1x64xf32> to vector<4x64xf32>
    %19 = arith.addf %17, %18 : vector<4x64xf32>
    %cst_17 = arith.constant 0.000000e+00 : f32
    %20 = vector.broadcast %cst_17 : f32 to vector<4x64xf32>
    %21 = arith.maximumf %19, %20 : vector<4x64xf32>
    %22 = arith.maximumf %15, %21 : vector<4x64xf32>
    %c0_18 = arith.constant 0 : index
    %c0_19 = arith.constant 0 : index
    %23 = vector.load %arg7[%c0_18, %c0_19] : memref<64x32xf32, #tpu.memory_space<vmem>>, vector<64x32xf32>
    %cst_20 = arith.constant dense<0.000000e+00> : vector<4x32xf32>
    %24 = tpu.matmul %22, %23, %cst_20 {dimension_numbers = #tpu.dot_dimension_numbers<[1], [0], [0], [1], [0, 0, 1, 1], [], []>} : vector<4x64xf32>, vector<64x32xf32>, vector<4x32xf32> -> vector<4x32xf32>
    %c0_21 = arith.constant 0 : index
    %c0_22 = arith.constant 0 : index
    %25 = vector.load %arg8[%c0_21, %c0_22] : memref<1x32xf32, #tpu.memory_space<vmem>>, vector<1x32xf32>
    %26 = vector.broadcast %25 : vector<1x32xf32> to vector<4x32xf32>
    %27 = arith.addf %24, %26 : vector<4x32xf32>
    %cst_23 = arith.constant 0.000000e+00 : f32
    %28 = vector.broadcast %cst_23 : f32 to vector<4x32xf32>
    %29 = arith.maximumf %27, %28 : vector<4x32xf32>
    %30 = vector.extract_strided_slice %29 {offsets = [0, 0], sizes = [2, 32], strides = [1, 1]} : vector<4x32xf32> to vector<2x32xf32>
    %31 = vector.extract_strided_slice %29 {offsets = [2, 0], sizes = [2, 32], strides = [1, 1]} : vector<4x32xf32> to vector<2x32xf32>
    %c0_24 = arith.constant 0 : index
    %c0_25 = arith.constant 0 : index
    %32 = vector.load %arg10[%c0_24, %c0_25] : memref<1x180xf32, #tpu.memory_space<vmem>>, vector<1x180xf32>
    %c0_26 = arith.constant 0 : index
    %c0_27 = arith.constant 0 : index
    %c0_28 = arith.constant 0 : index
    %33 = vector.load %arg9[%c0_26, %c0_27, %c0_28] : memref<4x32x180xf32, #tpu.memory_space<vmem>>, vector<1x32x180xf32>
    %34 = vector.shape_cast %33 : vector<1x32x180xf32> to vector<32x180xf32>
    %cst_29 = arith.constant dense<0.000000e+00> : vector<2x180xf32>
    %35 = tpu.matmul %1, %34, %cst_29 {dimension_numbers = #tpu.dot_dimension_numbers<[1], [0], [0], [1], [0, 0, 1, 1], [], []>} : vector<2x32xf32>, vector<32x180xf32>, vector<2x180xf32> -> vector<2x180xf32>
    %36 = vector.broadcast %32 : vector<1x180xf32> to vector<2x180xf32>
    %37 = arith.addf %35, %36 : vector<2x180xf32>
    %cst_30 = arith.constant 0.000000e+00 : f32
    %38 = vector.broadcast %cst_30 : f32 to vector<2x180xf32>
    %39 = arith.maximumf %37, %38 : vector<2x180xf32>
    %c1 = arith.constant 1 : index
    %c0_31 = arith.constant 0 : index
    %c0_32 = arith.constant 0 : index
    %40 = vector.load %arg9[%c1, %c0_31, %c0_32] : memref<4x32x180xf32, #tpu.memory_space<vmem>>, vector<1x32x180xf32>
    %41 = vector.shape_cast %40 : vector<1x32x180xf32> to vector<32x180xf32>
    %cst_33 = arith.constant dense<0.000000e+00> : vector<2x180xf32>
    %42 = tpu.matmul %1, %41, %cst_33 {dimension_numbers = #tpu.dot_dimension_numbers<[1], [0], [0], [1], [0, 0, 1, 1], [], []>} : vector<2x32xf32>, vector<32x180xf32>, vector<2x180xf32> -> vector<2x180xf32>
    %43 = vector.broadcast %32 : vector<1x180xf32> to vector<2x180xf32>
    %44 = arith.addf %42, %43 : vector<2x180xf32>
    %cst_34 = arith.constant 0.000000e+00 : f32
    %45 = vector.broadcast %cst_34 : f32 to vector<2x180xf32>
    %46 = arith.maximumf %44, %45 : vector<2x180xf32>
    %47 = arith.maximumf %39, %46 : vector<2x180xf32>
    %c2 = arith.constant 2 : index
    %c0_35 = arith.constant 0 : index
    %c0_36 = arith.constant 0 : index
    %48 = vector.load %arg9[%c2, %c0_35, %c0_36] : memref<4x32x180xf32, #tpu.memory_space<vmem>>, vector<1x32x180xf32>
    %49 = vector.shape_cast %48 : vector<1x32x180xf32> to vector<32x180xf32>
    %cst_37 = arith.constant dense<0.000000e+00> : vector<2x180xf32>
    %50 = tpu.matmul %1, %49, %cst_37 {dimension_numbers = #tpu.dot_dimension_numbers<[1], [0], [0], [1], [0, 0, 1, 1], [], []>} : vector<2x32xf32>, vector<32x180xf32>, vector<2x180xf32> -> vector<2x180xf32>
    %51 = vector.broadcast %32 : vector<1x180xf32> to vector<2x180xf32>
    %52 = arith.addf %50, %51 : vector<2x180xf32>
    %cst_38 = arith.constant 0.000000e+00 : f32
    %53 = vector.broadcast %cst_38 : f32 to vector<2x180xf32>
    %54 = arith.maximumf %52, %53 : vector<2x180xf32>
    %55 = arith.maximumf %47, %54 : vector<2x180xf32>
    %c3 = arith.constant 3 : index
    %c0_39 = arith.constant 0 : index
    %c0_40 = arith.constant 0 : index
    %56 = vector.load %arg9[%c3, %c0_39, %c0_40] : memref<4x32x180xf32, #tpu.memory_space<vmem>>, vector<1x32x180xf32>
    %57 = vector.shape_cast %56 : vector<1x32x180xf32> to vector<32x180xf32>
    %cst_41 = arith.constant dense<0.000000e+00> : vector<2x180xf32>
    %58 = tpu.matmul %1, %57, %cst_41 {dimension_numbers = #tpu.dot_dimension_numbers<[1], [0], [0], [1], [0, 0, 1, 1], [], []>} : vector<2x32xf32>, vector<32x180xf32>, vector<2x180xf32> -> vector<2x180xf32>
    %59 = vector.broadcast %32 : vector<1x180xf32> to vector<2x180xf32>
    %60 = arith.addf %58, %59 : vector<2x180xf32>
    %cst_42 = arith.constant 0.000000e+00 : f32
    %61 = vector.broadcast %cst_42 : f32 to vector<2x180xf32>
    %62 = arith.maximumf %60, %61 : vector<2x180xf32>
    %63 = arith.maximumf %55, %62 : vector<2x180xf32>
    %c0_43 = arith.constant 0 : index
    %c0_44 = arith.constant 0 : index
    %64 = vector.load %arg11[%c0_43, %c0_44] : memref<180x32xf32, #tpu.memory_space<vmem>>, vector<180x32xf32>
    %cst_45 = arith.constant dense<0.000000e+00> : vector<2x32xf32>
    %65 = tpu.matmul %63, %64, %cst_45 {dimension_numbers = #tpu.dot_dimension_numbers<[1], [0], [0], [1], [0, 0, 1, 1], [], []>} : vector<2x180xf32>, vector<180x32xf32>, vector<2x32xf32> -> vector<2x32xf32>
    %c0_46 = arith.constant 0 : index
    %c0_47 = arith.constant 0 : index
    %66 = vector.load %arg12[%c0_46, %c0_47] : memref<1x32xf32, #tpu.memory_space<vmem>>, vector<1x32xf32>
    %67 = vector.broadcast %66 : vector<1x32xf32> to vector<2x32xf32>
    %68 = arith.addf %65, %67 : vector<2x32xf32>
    %cst_48 = arith.constant 0.000000e+00 : f32
    %69 = vector.broadcast %cst_48 : f32 to vector<2x32xf32>
    %70 = arith.maximumf %68, %69 : vector<2x32xf32>
    %c0_49 = arith.constant 0 : index
    %c0_50 = arith.constant 0 : index
    %71 = vector.load %arg13[%c0_49, %c0_50] : memref<32x128xf32, #tpu.memory_space<vmem>>, vector<32x128xf32>
    %cst_51 = arith.constant dense<0.000000e+00> : vector<2x128xf32>
    %72 = tpu.matmul %70, %71, %cst_51 {dimension_numbers = #tpu.dot_dimension_numbers<[1], [0], [0], [1], [0, 0, 1, 1], [], []>} : vector<2x32xf32>, vector<32x128xf32>, vector<2x128xf32> -> vector<2x128xf32>
    %c0_52 = arith.constant 0 : index
    %c0_53 = arith.constant 0 : index
    %73 = vector.load %arg14[%c0_52, %c0_53] : memref<32x128xf32, #tpu.memory_space<vmem>>, vector<32x128xf32>
    %cst_54 = arith.constant dense<0.000000e+00> : vector<2x128xf32>
    %74 = tpu.matmul %30, %73, %cst_54 {dimension_numbers = #tpu.dot_dimension_numbers<[1], [0], [0], [1], [0, 0, 1, 1], [], []>} : vector<2x32xf32>, vector<32x128xf32>, vector<2x128xf32> -> vector<2x128xf32>
    %75 = arith.addf %72, %74 : vector<2x128xf32>
    %c0_55 = arith.constant 0 : index
    %c0_56 = arith.constant 0 : index
    %76 = vector.load %arg15[%c0_55, %c0_56] : memref<32x128xf32, #tpu.memory_space<vmem>>, vector<32x128xf32>
    %cst_57 = arith.constant dense<0.000000e+00> : vector<2x128xf32>
    %77 = tpu.matmul %31, %76, %cst_57 {dimension_numbers = #tpu.dot_dimension_numbers<[1], [0], [0], [1], [0, 0, 1, 1], [], []>} : vector<2x32xf32>, vector<32x128xf32>, vector<2x128xf32> -> vector<2x128xf32>
    %78 = arith.addf %75, %77 : vector<2x128xf32>
    %c0_58 = arith.constant 0 : index
    %c0_59 = arith.constant 0 : index
    %79 = vector.load %arg16[%c0_58, %c0_59] : memref<1x128xf32, #tpu.memory_space<vmem>>, vector<1x128xf32>
    %80 = vector.broadcast %79 : vector<1x128xf32> to vector<2x128xf32>
    %81 = arith.addf %78, %80 : vector<2x128xf32>
    %cst_60 = arith.constant 0.000000e+00 : f32
    %82 = vector.broadcast %cst_60 : f32 to vector<2x128xf32>
    %83 = arith.maximumf %81, %82 : vector<2x128xf32>
    %c0_61 = arith.constant 0 : index
    %c0_62 = arith.constant 0 : index
    %84 = vector.load %arg17[%c0_61, %c0_62] : memref<2x128xf32, #tpu.memory_space<vmem>>, vector<2x128xf32>
    tpu.vector_store %arg17[%c0_61, %c0_62], %83 {strides = array<i32>} : memref<2x128xf32, #tpu.memory_space<vmem>>, vector<2x128xf32>,
    return
  }
}

</mosaic_0001>

<bundles_post_ra>
// kernel: custom_simple_model_forward.1
= control target key start
LH: loop header
LB: loop body
LE: loop exit
PB: predicated region body
PF: predicated region fallthrough
CT: control target
= control target key end

     0   :  { %s1223_s0 = inlined_call_operand.vmem [shape: f32[4,16], index: 0, kind: input, shape index: {}]   ;;  %s1224_s1 = inlined_call_operand.vmem [shape: f32[2,32], index: 1, kind: input, shape index: {}]   ;;  %s1225_s2 = inlined_call_operand.hbm [shape: f32[16,32], index: 2, kind: input, shape index: {}]   ;;  %s1226_s3 = inlined_call_operand.vmem [shape: f32[1,32], index: 3, kind: input, shape index: {}]   ;;  %s1227_s4 = inlined_call_operand.hbm [shape: f32[32,64], index: 4, kind: input, shape index: {}]   ;;  %s1228_s5 = inlined_call_operand.hbm [shape: f32[32,64], index: 5, kind: input, shape index: {}]   ;;  %s1229_s6 = inlined_call_operand.vmem [shape: f32[1,64], index: 6, kind: input, shape index: {}]   ;;  %s1230_s7 = inlined_call_operand.hbm [shape: f32[64,32], index: 7, kind: input, shape index: {}]   ;;  %s1231_s8 = inlined_call_operand.vmem [shape: f32[1,32], index: 8, kind: input, shape index: {}]   ;;  %s1232_s9 = inlined_call_operand.hbm [shape: f32[4,32,180], index: 9, kind: input, shape index: {}]   ;;  %s1233_s10 = inlined_call_operand.vmem [shape: f32[1,180], index: 10, kind: input, shape index: {}]   ;;  %s1234_s11 = inlined_call_operand.hbm [shape: f32[180,32], index: 11, kind: input, shape index: {}]   ;;  %s1235_s12 = inlined_call_operand.vmem [shape: f32[1,32], index: 12, kind: input, shape index: {}]   ;;  %s1236_s13 = inlined_call_operand.hbm [shape: f32[32,128], index: 13, kind: input, shape index: {}]   ;;  %s1237_s14 = inlined_call_operand.hbm [shape: f32[32,128], index: 14, kind: input, shape index: {}]   ;;  %s1238_s15 = inlined_call_operand.hbm [shape: f32[32,128], index: 15, kind: input, shape index: {}]   ;;  %s1239_s16 = inlined_call_operand.vmem [shape: f32[1,128], index: 16, kind: input, shape index: {}]   ;;  %s1240_s17 = inlined_call_operand.hbm [shape: f32[2,128], index: 17, kind: output, shape index: {}]  }
   0x1   :  { %1241 = sst [smem:[#allocation24_spill]] %s1223_s0 }
   0x2   :  { %1242 = sst [smem:[#allocation25_spill]] %s1224_s1 }
   0x3   :  { %22 = vsyncpa [#allocation3], 0 }
   0x4   :  { %23 = vsyncpa [#allocation6], 0 }
   0x5   :  { %24 = vsyncpa [#allocation9], 0 }
   0x6   :  { %25 = vsyncpa [#allocation12], 0 }
   0x7   :  { %26 = vsyncpa [#allocation15], 0 }
   0x8   :  { %27 = vsyncpa [#allocation4], 0  ;;  %s51_s26 = sshll.u32 %s1227_s4, 4  ;;  %s1018_s27 = smov [#allocation5]   ;;  %s52_s26 = int_to_ptr.hbm [resolvable:$true] %s51_s26 }
   0x9   :  { %s53_s28 = sshll.u32 %s1018_s27, 4  ;;  %s79_s30 = sshll.u32 %s1230_s7, 4  ;;  %s54_s28 = int_to_ptr.vmem [resolvable:$true] %s53_s28  ;;  %s80_s30 = int_to_ptr.hbm [resolvable:$true] %s79_s30 }
   0xa   :  { %s1019_s18 = smov 128   ;;  %s1020_s19 = smov 8  }
   0xb   :  { %59 = dma.hbm_to_vmem [thread:$0]  %s52_s26, 512, %s54_s28, [#allocation6], %s1019_s18, %s1019_s18, %s1020_s19  }
   0xc   :  { %s1021_s1 = smov [#allocation8]   ;;  %s109_s4 = sshll.u32 %s1234_s11, 4  ;;  %s110_s4 = int_to_ptr.hbm [resolvable:$true] %s109_s4 }
   0xd   :  { %s81_s20 = sshll.u32 %s1021_s1, 4  ;;  %s137_s24 = sshll.u32 %s1237_s14, 4  ;;  %s82_s20 = int_to_ptr.vmem [resolvable:$true] %s81_s20  ;;  %s138_s24 = int_to_ptr.hbm [resolvable:$true] %s137_s24 }
   0xe   :  { %87 = dma.hbm_to_vmem [thread:$0]  %s80_s30, 1024, %s82_s20, [#allocation9], %s1019_s18, %s1019_s18, %s1020_s19  }
   0xf   :  { %s1022_s25 = smov [#allocation11]   ;;  %s1023_s26 = smov [#allocation14]  }
  0x10   :  { %s111_s27 = sshll.u32 %s1022_s25, 4  ;;  %s139_s11 = sshll.u32 %s1023_s26, 4  ;;  %s112_s27 = int_to_ptr.vmem [resolvable:$true] %s111_s27  ;;  %s140_s11 = int_to_ptr.vmem [resolvable:$true] %s139_s11 }
  0x11   :  { %117 = dma.hbm_to_vmem [thread:$0]  %s110_s4, 2944, %s112_s27, [#allocation12], %s1019_s18, %s1019_s18, %s1020_s19  }
  0x12   :  { %s36_s0 = sshll.u32 %s1225_s2, 4  ;;  %s64_s1 = sshll.u32 %s1228_s5, 4  ;;  %s37_s0 = int_to_ptr.hbm [resolvable:$true] %s36_s0  ;;  %s65_s1 = int_to_ptr.hbm [resolvable:$true] %s64_s1 }
  0x13   :  { %145 = dma.hbm_to_vmem [thread:$0]  %s138_s24, 512, %s140_s11, [#allocation15], %s1019_s18, %s1019_s18, %s1020_s19  }
  0x14   :  { %s1024_s20 = smov [#allocation2]   ;;  %s1025_s22 = smov [#allocation7]  }
  0x15   :  { %s38_s21 = sshll.u32 %s1024_s20, 4  ;;  %s66_s2 = sshll.u32 %s1025_s22, 4  ;;  %s39_s21 = int_to_ptr.vmem [resolvable:$true] %s38_s21  ;;  %s67_s2 = int_to_ptr.vmem [resolvable:$true] %s66_s2 }
  0x16   :  { %44 = dma.hbm_to_vmem [thread:$0]  %s37_s0, 256, %s39_s21, [#allocation3], %s1019_s18, %s1019_s18, %s1020_s19  }
  0x17   :  { %s94_s23 = sshll.u32 %s1232_s9, 4  ;;  %s1026_s5 = smov [#allocation10]   ;;  %s95_s23 = int_to_ptr.hbm [resolvable:$true] %s94_s23 }
  0x18   :  { %72 = dma.hbm_to_vmem [thread:$0]  %s65_s1, 512, %s67_s2, [#allocation6], %s1019_s18, %s1019_s18, %s1020_s19  }
  0x19   :  { %s96_s24 = sshll.u32 %s1026_s5, 4  ;;  %s124_s26 = sshll.u32 %s1236_s13, 4  ;;  %s97_s24 = int_to_ptr.vmem [resolvable:$true] %s96_s24  ;;  %s125_s26 = int_to_ptr.hbm [resolvable:$true] %s124_s26 }
  0x1a   :  { %s1027_s11 = smov 256   ;;  %s1028_s28 = smov 16  }
  0x1b   :  { %102 = dma.hbm_to_vmem [thread:$0]  %s95_s23, 4096, %s97_s24, [#allocation9], %s1027_s11, %s1027_s11, %s1028_s28  }
  0x1c   :  { %s1029_s29 = smov [#allocation13]   ;;  %s150_s30 = sshll.u32 %s1238_s15, 4  ;;  %s151_s30 = int_to_ptr.hbm [resolvable:$true] %s150_s30 }
  0x1d   :  { %s126_s0 = sshll.u32 %s1029_s29, 4  ;;  %s1030_s1 = smov [#allocation16]   ;;  %s127_s0 = int_to_ptr.vmem [resolvable:$true] %s126_s0 }
  0x1e   :  { %132 = dma.hbm_to_vmem [thread:$0]  %s125_s26, 512, %s127_s0, [#allocation12], %s1019_s18, %s1019_s18, %s1020_s19  }
  0x1f   :  { %s152_s20 = sshll.u32 %s1030_s1, 4  ;;  %s153_s20 = int_to_ptr.vmem [resolvable:$true] %s152_s20 }
  0x20   :  { %158 = dma.hbm_to_vmem [thread:$0]  %s151_s30, 512, %s153_s20, [#allocation15], %s1019_s18, %s1019_s18, %s1020_s19  }
  0x21   :  { %1006 = dma.done.wait [#allocation3], 256  }
  0x22   :  { %1007 = vsyncadd [#allocation3], 4294967040 }
  0x23   :  { %1008 = dma.done.wait [#allocation6], 1024  }
  0x24   :  { %1009 = vsyncadd [#allocation6], 4294966272 }
  0x25   :  { %1010 = dma.done.wait [#allocation9], 5120  }
  0x26   :  { %1011 = vsyncadd [#allocation9], 4294962176 }
  0x27   :  { %1012 = dma.done.wait [#allocation12], 3456  }
  0x28   :  { %1013 = vsyncadd [#allocation12], 4294963840 }
  0x29   :  { %1014 = dma.done.wait [#allocation15], 1024  }
  0x2a   :  { %1015 = vsyncadd [#allocation15], 4294966272  ;;  %v200_v0 = vld [vmem:[#allocation2 + $0x8] sm:$0xff]  ;;  %v199_v1 = vld [vmem:[#allocation2] sm:$0xff]  ;;  %s1243_s21 = sld [smem:[#allocation24_spill]]  ;;  %vm205_vm0 = vcmask 130048  }
  0x2b   :  { %223 = vmatpush.msra.mxu0 %v200_v0  ;;  %v266_v3 = vld [vmem:[#allocation7 + $0x18] sm:$0xff]  ;;  %v233_v5 = vld [vmem:[#allocation5 + $0x10] sm:$0xff]  ;;  %v232_v7 = vld [vmem:[#allocation5 + $0x8] sm:$0xff]  ;;  %vm238_vm1 = vcmask 261120   ;;  %s1244_s2 = sld [smem:[#allocation25_spill]]  ;;  %vm301_vm2 = vcmask 523264  }
  0x2c   :  { %v234_v4 = vld [vmem:[#allocation5 + $0x18] sm:$0xff]  ;;  %279 = vmatpush.msra.mxu2 %v266_v3  ;;  %v265_v6 = vld [vmem:[#allocation7 + $0x10] sm:$0xff]  ;;  %v264_v8 = vld [vmem:[#allocation7 + $0x8] sm:$0xff]  ;;  %vm575_vm3 = vcmask 1043456   ;;  %vm571_vm4 = vcmask 424960   ;;  %s1031_s26 = smov [#allocation17]  }
  0x2d   :  { %224 = vmatpush.msra.mxu0 %v199_v1  ;;  %v231_v9 = vld [vmem:[#allocation5] sm:$0xff]  ;;  %v334_v11 = vld [vmem:[#allocation10 + $0x38] sm:$0xff]  ;;  %v332_v12 = vld [vmem:[#allocation10 + $0x28] sm:$0xff]  ;;  %s714_s11 = sshll.u32 %s1031_s26, 4  ;;  %s716_s29 = sshll.u32 %s1240_s17, 4  ;;  %s715_s11 = int_to_ptr.vmem [resolvable:$true] %s714_s11  ;;  %s717_s29 = int_to_ptr.hbm [resolvable:$true] %s716_s29 }
  0x2e   :  { %280 = vmatpush.msra.mxu2 %v265_v6  ;;  %v263_v10 = vld [vmem:[#allocation7] sm:$0xff]  ;;  %v330_v13 = vld [vmem:[#allocation10 + $0x18] sm:$0xff]  ;;  %v328_v14 = vld [vmem:[#allocation10 + $0x8] sm:$0xff] }
  0x2f   :  { %254 = vmatpush.msrb.mxu0 %v234_v4  ;;  %v333_v15 = vld [vmem:[#allocation10 + $0x30] sm:$0xff]  ;;  %v331_v16 = vld [vmem:[#allocation10 + $0x20] sm:$0xff]  ;;  %v296_v19 = vld [vmem:[#allocation8 + $0x38] sm:$0xff] }
  0x30   :  { %v197_v2 = vld [vmem:[%s1243_s21] sm:$0xf]  ;;  %281 = vmatpush.msra.mxu2 %v264_v8  ;;  %v327_v18 = vld [vmem:[#allocation10] sm:$0xff]  ;;  %313 = vmatpush.msra.mxu3 %v296_v19  ;;  %v393_v25 = vld [vmem:[#allocation10 + $0x78] sm:$0xff] }
  0x31   :  { %730 = vmatmul.msk.f32.vlgmr.msra.gmra.mxu0 %vm205_vm0, %v197_v2  ;;  %v329_v17 = vld [vmem:[#allocation10 + $0x10] sm:$0xff]  ;;  %v390_v26 = vld [vmem:[#allocation10 + $0x60] sm:$0xff]  ;;  %v391_v27 = vld [vmem:[#allocation10 + $0x68] sm:$0xff] }
  0x32   :  { %255 = vmatpush.msrb.mxu0 %v233_v5  ;;  %282 = vmatpush.msra.mxu2 %v263_v10  ;;  %v761_v20 = vld [vmem:[%s1226_s3] ss:$0 sm:$0xff]  ;;  %v389_v29 = vld [vmem:[#allocation10 + $0x58] sm:$0xff]  ;;  %v386_v30 = vld [vmem:[#allocation10 + $0x40] sm:$0xff] }
  0x33   :  { %v392_v24 = vld [vmem:[#allocation10 + $0x70] sm:$0xff]  ;;  %v446_v32 = vld [vmem:[#allocation10 + $0xb8] sm:$0xff]  ;;  %v444_v33 = vld [vmem:[#allocation10 + $0xa8] sm:$0xff] }
  0x34   :  { %256 = vmatpush.msrb.mxu0 %v232_v7  ;;  %375 = vmatpush.msrb.mxu2 %v334_v11  ;;  %v388_v28 = vld [vmem:[#allocation10 + $0x50] sm:$0xff]  ;;  %v442_v34 = vld [vmem:[#allocation10 + $0x98] sm:$0xff]  ;;  %v387_v36 = vld [vmem:[#allocation10 + $0x48] sm:$0xff] }
  0x35   :  { %v1184_v31 = vld [vmem:[%s1244_s2] sm:$0x3]  ;;  %v440_v37 = vld [vmem:[#allocation10 + $0x88] sm:$0xff]  ;;  %v499_v40 = vld [vmem:[#allocation10 + $0xf8] sm:$0xff] }
  0x36   :  { %257 = vmatpush.msrb.mxu0 %v231_v9  ;;  %376 = vmatpush.msrb.mxu2 %v332_v12  ;;  %v295_v35 = vld [vmem:[#allocation8 + $0x30] sm:$0xff]  ;;  %v294_v38 = vld [vmem:[#allocation8 + $0x28] sm:$0xff]  ;;  %v293_v41 = vld [vmem:[#allocation8 + $0x20] sm:$0xff] }
  0x37   :  { %314 = vmatpush.msra.mxu3 %v295_v35  ;;  %v445_v39 = vld [vmem:[#allocation10 + $0xb0] sm:$0xff]  ;;  %v443_v42 = vld [vmem:[#allocation10 + $0xa0] sm:$0xff]  ;;  %v497_v43 = vld [vmem:[#allocation10 + $0xe8] sm:$0xff] }
  0x38   :  { %377 = vmatpush.msrb.mxu2 %v330_v13  ;;  %355 = vmatpush.msra.mxu0 %v333_v15  ;;  %v292_v44 = vld [vmem:[#allocation8 + $0x18] sm:$0xff]  ;;  %v441_v45 = vld [vmem:[#allocation10 + $0x90] sm:$0xff]  ;;  %v439_v48 = vld [vmem:[#allocation10 + $0x80] sm:$0xff] }
  0x39   :  { %315 = vmatpush.msra.mxu3 %v294_v38  ;;  %459 = vmatpush.msra.mxu1 %v445_v39  ;;  %v495_v46 = vld [vmem:[#allocation10 + $0xd8] sm:$0xff]  ;;  %v291_v47 = vld [vmem:[#allocation8 + $0x10] sm:$0xff]  ;;  %v493_v49 = vld [vmem:[#allocation10 + $0xc8] sm:$0xff] }
  0x3a   :  { %378 = vmatpush.msrb.mxu2 %v328_v14  ;;  %356 = vmatpush.msra.mxu0 %v331_v16  ;;  %v290_v50 = vld [vmem:[#allocation8 + $0x8] sm:$0xff]  ;;  %v289_v51 = vld [vmem:[#allocation8] sm:$0xff]  ;;  %v498_v52 = vld [vmem:[#allocation10 + $0xf0] sm:$0xff] }
  0x3b   :  { %316 = vmatpush.msra.mxu3 %v293_v41  ;;  %460 = vmatpush.msra.mxu1 %v443_v42  ;;  %v496_v53 = vld [vmem:[#allocation10 + $0xe0] sm:$0xff]  ;;  %v494_v54 = vld [vmem:[#allocation10 + $0xd0] sm:$0xff]  ;;  %v559_v0 = vld [vmem:[#allocation11 + $0x78] sm:$0xff] }
  0x3c   :  { %357 = vmatpush.msra.mxu0 %v329_v17  ;;  %v492_v55 = vld [vmem:[#allocation10 + $0xc0] sm:$0xff]  ;;  %v762_v56 = vld [vmem:[%s1229_s6] ss:$0 sm:$0xff]  ;;  %v565_v3 = vld [vmem:[#allocation11 + $0xa8] sm:$0xff] }
  0x3d   :  { %317 = vmatpush.msra.mxu3 %v292_v44  ;;  %461 = vmatpush.msra.mxu1 %v441_v45  ;;  %v566_v1 = vld [vmem:[#allocation11 + $0xb0] sm:$0xf]  ;;  %v557_v4 = vld [vmem:[#allocation11 + $0x68] sm:$0xff]  ;;  %v564_v5 = vld [vmem:[#allocation11 + $0xa0] sm:$0xff] }
  0x3e   :  { %358 = vmatpush.msra.mxu0 %v327_v18  ;;  %v558_v2 = vld [vmem:[#allocation11 + $0x70] sm:$0xff]  ;;  %v556_v6 = vld [vmem:[#allocation11 + $0x60] sm:$0xff]  ;;  %v563_v7 = vld [vmem:[#allocation11 + $0x98] sm:$0xff] }
  0x3f   :  { %318 = vmatpush.msra.mxu3 %v291_v47  ;;  %462 = vmatpush.msra.mxu1 %v439_v48  ;;  %v555_v8 = vld [vmem:[#allocation11 + $0x58] sm:$0xff]  ;;  %v562_v9 = vld [vmem:[#allocation11 + $0x90] sm:$0xff]  ;;  %v561_v11 = vld [vmem:[#allocation11 + $0x88] sm:$0xff] }
  0x40   :  { %738 = vmatmul.msk.f32.vlgmr.msra.gmra.mxu1 %vm238_vm1, %v1184_v31  ;;  %v554_v10 = vld [vmem:[#allocation11 + $0x50] sm:$0xff]  ;;  %v553_v13 = vld [vmem:[#allocation11 + $0x48] sm:$0xff]  ;;  %v560_v14 = vld [vmem:[#allocation11 + $0x80] sm:$0xff] }
  0x41   :  { %319 = vmatpush.msra.mxu3 %v290_v50  ;;  %579 = vmatpush.msrb.mxu1 %v559_v0  ;;  %v627_v12 = vld [vmem:[#allocation14 + $0x18] sm:$0xff]  ;;  %v552_v16 = vld [vmem:[#allocation11 + $0x40] sm:$0xff]  ;;  %v551_v35 = vld [vmem:[#allocation11 + $0x38] sm:$0xff] }
  0x42   :  { %v326_v18 = vld [vmem:[%s1233_s10] sm:$0x3]  ;;  %v625_v38 = vld [vmem:[#allocation14 + $0x8] sm:$0xff]  ;;  %v549_v39 = vld [vmem:[#allocation11 + $0x28] sm:$0xff] }
  0x43   :  { %320 = vmatpush.msra.mxu3 %v289_v51  ;;  %580 = vmatpush.msrb.mxu1 %v558_v2  ;;  %v337_v19 = vperm.slane %v326_v18, 1  ;;  %v548_v41 = vld [vmem:[#allocation11 + $0x20] sm:$0xff]  ;;  %v677_v42 = vld [vmem:[#allocation16 + $0x18] sm:$0xff]  ;;  %v676_v44 = vld [vmem:[#allocation16 + $0x10] sm:$0xff]  ;;  %v336_v50 = vperm.slane %v326_v18, 0 }
  0x44   :  { %v546_v45 = vld [vmem:[#allocation11 + $0x10] sm:$0xff]  ;;  %v545_v47 = vld [vmem:[#allocation11 + $0x8] sm:$0xff]  ;;  %v674_v48 = vld [vmem:[#allocation16] sm:$0xff] }
  0x45   :  { %512 = vmatpush.msrb.mxu3 %v498_v52  ;;  %581 = vmatpush.msrb.mxu1 %v557_v4  ;;  %v763_v51 = vld [vmem:[%s1231_s8] ss:$0 sm:$0xff] }
  0x46   :  { %v765_v18 = vld [vmem:[%s1239_s16] ss:$0 sm:$0xff] }
  0x47   :  { %513 = vmatpush.msrb.mxu3 %v496_v53  ;;  %582 = vmatpush.msrb.mxu1 %v556_v6  ;;  %v622_v6 = vld [vmem:[#allocation13 + $0x10] sm:$0xff] }
  0x49   :  { %514 = vmatpush.msrb.mxu3 %v494_v54  ;;  %583 = vmatpush.msrb.mxu1 %v555_v8  ;;  %v620_v8 = vld [vmem:[#allocation13] sm:$0xff] }
  0x4b   :  { %515 = vmatpush.msrb.mxu3 %v492_v55  ;;  %584 = vmatpush.msrb.mxu1 %v554_v10 }
  0x4d   :  { %585 = vmatpush.msrb.mxu1 %v553_v13 }
  0x4f   :  { %586 = vmatpush.msrb.mxu1 %v552_v16 }
  0x51   :  { %587 = vmatpush.msrb.mxu1 %v551_v35 }
  0xae   :  { %v226_v21 = vpop.f32.mrf.mxu0 }
  0xaf   :  { %v227_v22 = vadd.f32 %v761_v20, %v226_v21 }
  0xb1   :  { %v229_v23 = vmax.f32 %v227_v22, 0.0 }
  0xb3   :  { %731 = vmatmul.msk.f32.vlgmr.msrb.gmra.mxu0 %vm238_vm1, %v229_v23  ;;  %732 = vmatmul.msk.f32.vlgmr.msra.gmra.mxu2 %vm238_vm1, %v229_v23 }
  0xb4   :  { %406 = vmatpush.msra.mxu2 %v392_v24  ;;  %426 = vmatpush.msrb.mxu0 %v393_v25 }
  0xb6   :  { %407 = vmatpush.msra.mxu2 %v390_v26  ;;  %427 = vmatpush.msrb.mxu0 %v391_v27 }
  0xb8   :  { %408 = vmatpush.msra.mxu2 %v388_v28  ;;  %428 = vmatpush.msrb.mxu0 %v389_v29 }
  0xba   :  { %409 = vmatpush.msra.mxu2 %v386_v30  ;;  %429 = vmatpush.msrb.mxu0 %v387_v36  ;;  %v626_v36 = vld [vmem:[#allocation14 + $0x10] sm:$0xff] }
  0xbb   :  { %735 = vmatmul.msk.f32.vlgmr.msrb.gmra.mxu2 %vm238_vm1, %v1184_v31  ;;  %734 = vmatmul.msk.f32.vlgmr.msra.gmra.mxu0 %vm238_vm1, %v1184_v31 }
  0xbc   :  { %479 = vmatpush.msrb.mxu2 %v446_v32  ;;  %532 = vmatpush.msra.mxu0 %v499_v40  ;;  %v624_v40 = vld [vmem:[#allocation14] sm:$0xff] }
  0xbd   :  { %v464_v54 = vpop.f32.mrf.mxu1 }
  0xbe   :  { %480 = vmatpush.msrb.mxu2 %v444_v33  ;;  %533 = vmatpush.msra.mxu0 %v497_v43  ;;  %v547_v43 = vld [vmem:[#allocation11 + $0x18] sm:$0xff] }
  0xc0   :  { %481 = vmatpush.msrb.mxu2 %v442_v34  ;;  %534 = vmatpush.msra.mxu0 %v495_v46  ;;  %v675_v46 = vld [vmem:[#allocation16 + $0x8] sm:$0xff] }
  0xc2   :  { %482 = vmatpush.msrb.mxu2 %v440_v37  ;;  %535 = vmatpush.msra.mxu0 %v493_v49  ;;  %v550_v37 = vld [vmem:[#allocation11 + $0x30] sm:$0xff]  ;;  %v544_v49 = vld [vmem:[#allocation11] sm:$0xff] }
  0xc3   :  { %736 = vmatmul.msk.f32.vlgmr.msra.gmra.mxu2 %vm238_vm1, %v1184_v31  ;;  %737 = vmatmul.msk.f32.vlgmr.msrb.gmra.mxu0 %vm238_vm1, %v1184_v31 }
  0xc4   :  { %742 = vmatpush.msk.msra.mxu2 %vm575_vm3, %v566_v1  ;;  %588 = vmatpush.msrb.mxu1 %v550_v37 }
  0xc6   :  { %609 = vmatpush.msra.mxu2 %v565_v3  ;;  %589 = vmatpush.msrb.mxu1 %v549_v39 }
  0xc8   :  { %610 = vmatpush.msra.mxu2 %v564_v5  ;;  %590 = vmatpush.msrb.mxu1 %v548_v41  ;;  %v623_v5 = vld [vmem:[#allocation13 + $0x18] sm:$0xff] }
  0xc9   :  { %666 = vmatpush.msrb.mxu0 %v623_v5 }
  0xca   :  { %611 = vmatpush.msra.mxu2 %v563_v7  ;;  %591 = vmatpush.msrb.mxu1 %v547_v43  ;;  %v621_v7 = vld [vmem:[#allocation13 + $0x8] sm:$0xff] }
  0xcb   :  { %739 = vmatmul.msk.f32.vlgmr.msrb.gmra.mxu2 %vm238_vm1, %v1184_v31  ;;  %741 = vmatmul.msk.f32.vlgmr.msra.gmra.mxu0 %vm238_vm1, %v1184_v31 }
  0xcc   :  { %612 = vmatpush.msra.mxu2 %v562_v9  ;;  %592 = vmatpush.msrb.mxu1 %v546_v45  ;;  %v764_v9 = vld [vmem:[%s1235_s12] ss:$0 sm:$0xff] }
  0xcd   :  { %667 = vmatpush.msrb.mxu0 %v622_v6 }
  0xce   :  { %613 = vmatpush.msra.mxu2 %v561_v11  ;;  %593 = vmatpush.msrb.mxu1 %v545_v47 }
  0xcf   :  { %668 = vmatpush.msrb.mxu0 %v621_v7 }
  0xd0   :  { %614 = vmatpush.msra.mxu2 %v560_v14  ;;  %594 = vmatpush.msrb.mxu1 %v544_v49 }
  0xd1   :  { %669 = vmatpush.msrb.mxu0 %v620_v8 }
 0x130   :  { %v259_v57 = vpop.f32.mrf.mxu0 }
 0x131   :  { %v260_v58 = vadd.f32 %v762_v56, %v259_v57 }
 0x133   :  { %v262_v61 = vmax.f32 %v260_v58, 0.0 }
 0x136   :  { %v284_v59 = vpop.f32.mrf.mxu2 }
 0x137   :  { %v285_v60 = vadd.f32 %v762_v56, %v284_v59  ;;  %v465_v59 = vadd.f32 %v464_v54, %v336_v50 }
 0x138   :  { %v360_v17 = vpop.f32.mrf.mxu0 }
 0x139   :  { %v287_v62 = vmax.f32 %v285_v60, 0.0  ;;  %v361_v52 = vadd.f32 %v360_v17, %v336_v50 }
 0x13b   :  { %v288_v63 = vmax.f32 %v262_v61, %v287_v62  ;;  %v383_v57 = vmax.f32 %v361_v52, 0.0  ;;  %v487_v62 = vmax.f32 %v465_v59, 0.0 }
 0x13d   :  { %733 = vmatmul.msk.f32.vlgmr.msra.gmra.mxu3 %vm301_vm2, %v288_v63 }
 0x13e   :  { %643 = vmatpush.msra.mxu3 %v627_v12  ;;  %v380_v15 = vpop.f32.mrf.mxu2 }
 0x13f   :  { %v381_v21 = vadd.f32 %v380_v15, %v337_v19 }
 0x140   :  { %v431_v22 = vpop.f32.mrf.mxu0  ;;  %644 = vmatpush.msra.mxu3 %v626_v36 }
 0x141   :  { %v432_v23 = vadd.f32 %v431_v22, %v337_v19  ;;  %v384_v24 = vmax.f32 %v381_v21, 0.0 }
 0x142   :  { %645 = vmatpush.msra.mxu3 %v625_v38 }
 0x143   :  { %v435_v25 = vmax.f32 %v432_v23, 0.0 }
 0x144   :  { %646 = vmatpush.msra.mxu3 %v624_v40 }
 0x145   :  { %740 = vmatmul.msk.f32.vlgmr.msrb.gmra.mxu3 %vm238_vm1, %v1184_v31  ;;  %v437_v27 = vmax.f32 %v384_v24, %v435_v25 }
 0x146   :  { %v411_v20 = vpop.f32.mrf.mxu2  ;;  %693 = vmatpush.msrb.mxu3 %v677_v42 }
 0x147   :  { %v412_v53 = vadd.f32 %v411_v20, %v336_v50 }
 0x148   :  { %v537_v29 = vpop.f32.mrf.mxu0  ;;  %694 = vmatpush.msrb.mxu3 %v676_v44 }
 0x149   :  { %v538_v31 = vadd.f32 %v537_v29, %v337_v19  ;;  %v434_v58 = vmax.f32 %v412_v53, 0.0 }
 0x14a   :  { %695 = vmatpush.msrb.mxu3 %v675_v46 }
 0x14b   :  { %v541_v33 = vmax.f32 %v538_v31, 0.0  ;;  %v436_v61 = vmax.f32 %v383_v57, %v434_v58 }
 0x14c   :  { %696 = vmatpush.msrb.mxu3 %v674_v48 }
 0x14d   :  { %v489_v1 = vmax.f32 %v436_v61, %v487_v62 }
 0x14e   :  { %v484_v26 = vpop.f32.mrf.mxu2 }
 0x14f   :  { %v485_v28 = vadd.f32 %v484_v26, %v337_v19 }
 0x151   :  { %v488_v30 = vmax.f32 %v485_v28, 0.0 }
 0x153   :  { %v490_v32 = vmax.f32 %v437_v27, %v488_v30 }
 0x155   :  { %v543_v34 = vmax.f32 %v490_v32, %v541_v33 }
 0x157   :  { %743 = vmatmul.msk.f32.vlgmr.msra.gmra.mxu2 %vm571_vm4, %v543_v34 }
 0x1c0   :  { %v322_v55 = vpop.f32.mrf.mxu3 }
 0x1c1   :  { %v323_v56 = vadd.f32 %v763_v51, %v322_v55 }
 0x1c3   :  { %v325_v60 = vmax.f32 %v323_v56, 0.0 }
 0x1c5   :  { %744 = vmatmul.msk.f32.vlgmr.msra.gmra.mxu3 %vm238_vm1, %v325_v60  ;;  %v678_v2 = vrot.slane %v325_v60, 2 }
 0x1c8   :  { %v517_v63 = vpop.f32.mrf.mxu3 }
 0x1c9   :  { %v518_v0 = vadd.f32 %v517_v63, %v336_v50 }
 0x1cb   :  { %v540_v3 = vmax.f32 %v518_v0, 0.0 }
 0x1cd   :  { %v542_v4 = vmax.f32 %v489_v1, %v540_v3  ;;  %746 = vmatmul.msk.f32.vlgmr.msrb.gmra.mxu3 %vm238_vm1, %v678_v2 }
 0x1cf   :  { %595 = vmatmul.f32.vlgmr.msrb.gmra.mxu1 %v542_v4 }
 0x1da   :  { %v616_v12 = vpop.f32.mrf.mxu2 }
 0x248   :  { %v648_v15 = vpop.f32.mrf.mxu3 }
 0x24c   :  { %v596_v10 = vpop.f32.mrf.mxu1 }
 0x24d   :  { %v597_v11 = vadd.f32 %v764_v9, %v596_v10 }
 0x24f   :  { %v617_v13 = vadd.f32 %v616_v12, %v597_v11 }
 0x250   :  { %v698_v19 = vpop.f32.mrf.mxu3 }
 0x251   :  { %v619_v14 = vmax.f32 %v617_v13, 0.0 }
 0x253   :  { %745 = vmatmul.msk.f32.vlgmr.msrb.gmra.mxu0 %vm238_vm1, %v619_v14 }
 0x2d0   :  { %v671_v16 = vpop.f32.mrf.mxu0 }
 0x2d1   :  { %v672_v17 = vadd.f32 %v671_v16, %v648_v15 }
 0x2d3   :  { %v701_v20 = vadd.f32 %v698_v19, %v672_v17 }
 0x2d5   :  { %v706_v21 = vadd.f32 %v765_v18, %v701_v20 }
 0x2d7   :  { %v707_v22 = vmax.f32 %v706_v21, 0.0 }
 0x2d9   :  { %708 = vst [vmem:[#allocation17] sm:$0x3] %v707_v22 }
 0x2da   :  { %719 = dma.vmem_to_hbm [thread:$0]  %s715_s11, 32, %s717_s29, [#allocation4]  }
 0x2db   :  { %1016 = dma.done.wait [#allocation4], 32  }
 0x2dc   :  { %1017 = vsyncadd [#allocation4], 4294967264 }
 0x2dd   :  { %724 = vsyncpa [#allocation3], 1 }
 0x2de   :  { %725 = vsyncpa [#allocation6], 1 }
 0x2df   :  { %726 = vsyncpa [#allocation9], 1 }
 0x2e0   :  { %727 = vsyncpa [#allocation12], 1 }
 0x2e1   :  { %728 = vsyncpa [#allocation15], 1 }
 0x2e2   :  { %729 = vsyncpa [#allocation4], 1 }

</bundles_post_ra>
